<compile_context>
chip_gen: v7x
topology: tpu7x:2x2x1
jax: 0.10.0
libtpu: 0.0.40
codegen_flags: <defaults>
</compile_context>

<pallas_src>
import functools

import jax
import jax.numpy as jnp
from jax.experimental import pallas as pl
from jax.experimental.pallas import tpu as pltpu


def _contrastive_loss_kernel(o1_ref, o2_ref, lab_ref, inv2_ref, out_ref,
                             *, tem, eps, binary_label, matmul_dtype):
    # o1_ref  : (TQ, D)  original dtype   (row tile of output1)
    # o2_ref  : (B, D)   original dtype   (resident, single-buffered)
    # lab_ref : (TQ, B)  narrow dtype ok  (row tile of label)
    # inv2_ref: (1, B)   f32              (precomputed inverse column norms)
    # out_ref : (8, B)   f32              (lane-dense per-tile partial sum)
    x1 = o1_ref[...]
    x1f = x1.astype(jnp.float32)

    # Fold the row normalization and 1/tem into the LHS operand (O(TQ*D) work).
    # Note: eps is added to the squared norm (minor difference vs. PyTorch's
    # clamp of the norm itself; only matters for near-zero rows).
    inv1t = jax.lax.rsqrt(
        jnp.sum(x1f * x1f, axis=1, keepdims=True) + eps) * (1.0 / tem)  # (TQ,1)

    md = matmul_dtype if matmul_dtype is not None else x1.dtype
    x1s = (x1f * inv1t).astype(md)                                      # (TQ, D)
    rhs = o2_ref[...]
    if rhs.dtype != md:
        rhs = rhs.astype(md)

    # Raw similarity on the MXU, accumulated in f32; only the column (inv2)
    # scaling remains as per-element VPU work.
    raw = jax.lax.dot_general(
        x1s, rhs,
        dimension_numbers=(((1,), (1,)), ((), ())),
        preferred_element_type=jnp.float32)                             # (TQ, B)
    # TODO(synk): per review item 12, check the bundle for a per-step rhs
    # relayout; if vxpose shows up every iteration, pre-transpose output2 once.
    cos = raw * inv2_ref[...]                                           # (TQ, B)

    lab = lab_ref[...].astype(jnp.float32)                              # (TQ, B)

    # Constant-shift log-sum-exp: cos_sim <= 1  =>  cos <= 1/tem, so exp args
    # are <= 0.  Identical to log(sum(exp(cos))) mathematically.
    shift = 1.0 / tem
    lse = shift + jnp.log(
        jnp.sum(jnp.exp(cos - shift), axis=1, keepdims=True))           # (TQ, 1)

    if binary_label:
        scores = (cos - lse) * lab            # identical for 0/1 masks
    else:
        scores = (cos * lab - lse) * lab      # exact original form

    # VALU-only partial reduction to a lane-dense (8, B) block: split the row
    # axis into (TQ//8, 8) vreg rows (pure reinterpretation) and add them.
    tq, b = scores.shape
    if tq % 8 == 0:
        part = scores.reshape(tq // 8, 8, b).sum(axis=0)                # (8, B)
    else:  # only reachable with a user-forced non-multiple-of-8 row_tile
        colsum = jnp.sum(scores, axis=0, keepdims=True)                 # (1, B)
        part = jnp.concatenate([colsum, jnp.zeros((7, b), jnp.float32)], axis=0)

    out_ref[...] = part


def _vmem_budget_and_limit():
    """Per-generation VMEM tile budget / scoped limit (bytes)."""
    try:
        cap = pltpu.get_tpu_info().vmem_capacity_bytes
    except Exception:
        cap = 64 * 1024 * 1024            # conservative default (v7x per-core)
    budget = int(cap * 0.30)              # ~19 MiB on v7x, ~38 MiB on v5e/v6e
    limit = min(int(cap * 0.50), 64 * 1024 * 1024)
    return budget, max(limit, budget + (4 << 20))


def _choose_row_tile(b_rows, b_cols, d, x1_bytes, x2_bytes, lab_bytes, budget):
    """Largest row tile (divisor of b_rows, multiple of 8) within the budget."""
    for tq in (1024, 512, 256, 128, 64, 32, 16, 8):
        if b_rows % tq:
            continue
        est = (2 * tq * d * x1_bytes          # output1 tile, double-buffered
               + b_cols * d * x2_bytes        # output2, resident single buffer
               + 2 * tq * b_cols * lab_bytes  # label tile, double-buffered
               + b_cols * 4                   # inv2, resident single buffer
               + 2 * 8 * b_cols * 4           # (8, B) partial out block
               + 4 * tq * b_cols * 4)         # cos/exp/scores/label-f32 temps
        if est <= budget:
            return tq
    return 8


def contrastive_loss(output1, output2, label, tem=0.05, eps=1e-12,
                     row_tile=None, binary_label=False, matmul_dtype=None):
    """Pallas-fused ContrastiveLoss.forward. Returns a scalar float32.

    `binary_label=True` drops one multiply per element (valid for 0/1 masks);
    `matmul_dtype=jnp.bfloat16` trades a little precision for MXU throughput
    (mostly useful on v5e when inputs arrive as f32).
    """
    B, D = output1.shape
    assert output2.shape == (B, D)
    assert label.shape == (B, B)

    # Pad query rows to a multiple of 8 (sublane alignment). Padded label rows
    # are zero, so the padded rows contribute exactly 0 to the summed loss;
    # the LSE columns are untouched (output2 is never padded).
    b_rows = ((B + 7) // 8) * 8
    if b_rows != B:
        output1 = jnp.pad(output1, ((0, b_rows - B), (0, 0)))
        label = jnp.pad(label, ((0, b_rows - B), (0, 0)))

    # Tiny wrapper-side precompute: inverse L2 column norms of output2, (1, B).
    x2f = output2.astype(jnp.float32)
    inv2 = jax.lax.rsqrt(jnp.sum(x2f * x2f, axis=1) + eps).reshape(1, B)

    budget, vmem_limit = _vmem_budget_and_limit()
    x1_bytes = jnp.dtype(output1.dtype).itemsize
    x2_bytes = jnp.dtype(output2.dtype).itemsize
    lab_bytes = jnp.dtype(label.dtype).itemsize

    tq = row_tile if row_tile is not None else _choose_row_tile(
        b_rows, B, D, x1_bytes, x2_bytes, lab_bytes, budget)
    assert b_rows % tq == 0, "row tile must divide the (padded) batch"
    num_tiles = b_rows // tq

    kernel = functools.partial(
        _contrastive_loss_kernel,
        tem=float(tem), eps=float(eps),
        binary_label=binary_label, matmul_dtype=matmul_dtype)

    partials = pl.pallas_call(
        kernel,
        out_shape=jax.ShapeDtypeStruct((num_tiles, 8, B), jnp.float32),
        grid_spec=pltpu.PrefetchScalarGridSpec(
            num_scalar_prefetch=0,
            grid=(num_tiles,),
            in_specs=[
                # output1 row tile (pipelined / double-buffered).
                pl.BlockSpec((tq, D), lambda i: (i, 0)),
                # output2: VMEM-resident, constant index map -> single buffer.
                pl.BlockSpec((B, D), lambda i: (0, 0),
                             pipeline_mode=pl.Buffered(1)),
                # label row tile (narrow dtype OK, cast in-kernel).
                pl.BlockSpec((tq, B), lambda i: (i, 0)),
                # precomputed inverse column norms, resident single buffer.
                pl.BlockSpec((1, B), lambda i: (0, 0),
                             pipeline_mode=pl.Buffered(1)),
            ],
            # Lane-dense per-tile partials; each grid step owns its own block,
            # so the grid axis is safely "parallel" (v7x dual-TC sharding).
            out_specs=pl.BlockSpec((None, 8, B), lambda i: (i, 0, 0)),
        ),
        compiler_params=pltpu.CompilerParams(
            dimension_semantics=("parallel",),
            vmem_limit_bytes=vmem_limit,
        ),
    )(output1, output2, label, inv2)

    # Single tiny cross-lane reduce + mean normalization (original B*B count).
    return -jnp.sum(partials) / (B * B)


def _reference_loss(output1, output2, label, tem=0.05, eps=1e-12):
    # Plain-JAX reference mirroring the PyTorch module exactly.
    x1 = output1.astype(jnp.float32)
    x2 = output2.astype(jnp.float32)
    lab = label.astype(jnp.float32)
    x1n = x1 / jnp.sqrt(jnp.sum(x1 * x1, axis=1, keepdims=True) + eps)
    x2n = x2 / jnp.sqrt(jnp.sum(x2 * x2, axis=1, keepdims=True) + eps)
    cos = (x1n @ x2n.T) / tem
    sim_ii = cos * lab
    lse = jnp.log(jnp.sum(jnp.exp(cos), axis=1, keepdims=True))
    scores = (sim_ii - lse) * lab
    return -jnp.mean(scores)


if __name__ == "__main__":
    key = jax.random.PRNGKey(0)
    k1, k2, k3, k4 = jax.random.split(key, 4)

    # Small demo shapes: batch=8, hidden=128 (lane-aligned feature dim).
    B, D = 8, 128
    output1 = jax.random.normal(k1, (B, D), dtype=jnp.float32)
    output2 = jax.random.normal(k2, (B, D), dtype=jnp.float32)
    label = jnp.eye(B, dtype=jnp.bfloat16)   # narrow 0/1 mask (halves HBM reads)

    loss = jax.block_until_ready(contrastive_loss(output1, output2, label, tem=0.05))
    ref = _reference_loss(output1, output2, label, tem=0.05)
    assert jnp.allclose(loss, ref, rtol=1e-4, atol=1e-4), (loss, ref)

    # Multi-tile path: batch=32 split into 4 independent ("parallel") row tiles
    # of 8 — exercises the per-tile partial outputs and the wrapper reduction.
    B2, D2 = 32, 128
    o1b = jax.random.normal(k3, (B2, D2), dtype=jnp.float32)
    o2b = jax.random.normal(k4, (B2, D2), dtype=jnp.float32)
    labb = jnp.eye(B2, dtype=jnp.bfloat16)
    loss2 = jax.block_until_ready(
        contrastive_loss(o1b, o2b, labb, tem=0.05, row_tile=8, binary_label=True))
    ref2 = _reference_loss(o1b, o2b, labb, tem=0.05)
    assert jnp.allclose(loss2, ref2, rtol=1e-4, atol=1e-4), (loss2, ref2)

    print("KERNEL_OK")
</pallas_src>

<mosaic_0001>
module attributes {stable_mosaic.version = 11 : i64} {
  func.func @_contrastive_loss_kernel(%arg0: i32, %arg1: memref<8x128xf32, #tpu.memory_space<vmem>>, %arg2: memref<8x128xf32, #tpu.memory_space<vmem>>, %arg3: memref<8x8xbf16, #tpu.memory_space<vmem>>, %arg4: memref<1x8xf32, #tpu.memory_space<vmem>>, %arg5: memref<1x8x8xf32, #tpu.memory_space<vmem>>) attributes {dimension_semantics = [#tpu.dimension_semantics<parallel>], iteration_bounds = array<i64: 1>, scalar_prefetch = 0 : i64, scratch_operands = 0 : i64, tpu.core_type = #tpu.core_type<tc>, window_params = [{transform_indices = @transform_0, window_bounds = array<i64: 8, 128>}, {pipeline_mode = #tpu.pipeline_mode<synchronous>, transform_indices = @transform_1, window_bounds = array<i64: 8, 128>}, {transform_indices = @transform_2, window_bounds = array<i64: 8, 8>}, {pipeline_mode = #tpu.pipeline_mode<synchronous>, transform_indices = @transform_3, window_bounds = array<i64: 1, 8>}, {transform_indices = @transform_4, window_bounds = array<i64: 1, 8, 8>}]} {
    %c0 = arith.constant 0 : index
    %c0_0 = arith.constant 0 : index
    %0 = vector.load %arg1[%c0, %c0_0] : memref<8x128xf32, #tpu.memory_space<vmem>>, vector<8x128xf32>
    %1 = arith.mulf %0, %0 : vector<8x128xf32>
    %cst = arith.constant dense<0.000000e+00> : vector<8xf32>
    %2 = vector.multi_reduction <add>, %1, %cst [1] : vector<8x128xf32> to vector<8xf32>
    %3 = vector.shape_cast %2 : vector<8xf32> to vector<8x1xf32>
    %cst_1 = arith.constant 9.99999996E-13 : f32
    %4 = vector.broadcast %cst_1 : f32 to vector<8x1xf32>
    %5 = arith.addf %3, %4 : vector<8x1xf32>
    %6 = math.rsqrt %5 : vector<8x1xf32>
    %cst_2 = arith.constant 2.000000e+01 : f32
    %7 = vector.broadcast %cst_2 : f32 to vector<8x1xf32>
    %8 = arith.mulf %6, %7 : vector<8x1xf32>
    %9 = vector.broadcast %8 : vector<8x1xf32> to vector<8x128xf32>
    %10 = arith.mulf %0, %9 : vector<8x128xf32>
    %c0_3 = arith.constant 0 : index
    %c0_4 = arith.constant 0 : index
    %11 = vector.load %arg2[%c0_3, %c0_4] : memref<8x128xf32, #tpu.memory_space<vmem>>, vector<8x128xf32>
    %cst_5 = arith.constant dense<0.000000e+00> : vector<8x8xf32>
    %12 = tpu.matmul %10, %11, %cst_5 {dimension_numbers = #tpu.dot_dimension_numbers<[1], [1], [0], [0], [0, 0, 1, 0], [], []>} : vector<8x128xf32>, vector<8x128xf32>, vector<8x8xf32> -> vector<8x8xf32>
    %c0_6 = arith.constant 0 : index
    %c0_7 = arith.constant 0 : index
    %13 = vector.load %arg4[%c0_6, %c0_7] : memref<1x8xf32, #tpu.memory_space<vmem>>, vector<1x8xf32>
    %14 = vector.broadcast %13 : vector<1x8xf32> to vector<8x8xf32>
    %15 = arith.mulf %12, %14 : vector<8x8xf32>
    %c0_8 = arith.constant 0 : index
    %c0_9 = arith.constant 0 : index
    %16 = vector.load %arg3[%c0_8, %c0_9] : memref<8x8xbf16, #tpu.memory_space<vmem>>, vector<8x8xbf16>
    %17 = arith.extf %16 : vector<8x8xbf16> to vector<8x8xf32>
    %cst_10 = arith.constant 2.000000e+01 : f32
    %18 = vector.broadcast %cst_10 : f32 to vector<8x8xf32>
    %19 = arith.subf %15, %18 : vector<8x8xf32>
    %20 = math.exp %19 : vector<8x8xf32>
    %cst_11 = arith.constant dense<0.000000e+00> : vector<8xf32>
    %21 = vector.multi_reduction <add>, %20, %cst_11 [1] : vector<8x8xf32> to vector<8xf32>
    %22 = vector.shape_cast %21 : vector<8xf32> to vector<8x1xf32>
    %23 = math.log %22 : vector<8x1xf32>
    %cst_12 = arith.constant 2.000000e+01 : f32
    %24 = vector.broadcast %cst_12 : f32 to vector<8x1xf32>
    %25 = arith.addf %24, %23 : vector<8x1xf32>
    %26 = arith.mulf %15, %17 : vector<8x8xf32>
    %27 = vector.broadcast %25 : vector<8x1xf32> to vector<8x8xf32>
    %28 = arith.subf %26, %27 : vector<8x8xf32>
    %29 = arith.mulf %28, %17 : vector<8x8xf32>
    %30 = vector.shape_cast %29 : vector<8x8xf32> to vector<1x8x8xf32>
    %cst_13 = arith.constant dense<0.000000e+00> : vector<8x8xf32>
    %31 = vector.multi_reduction <add>, %30, %cst_13 [0] : vector<1x8x8xf32> to vector<8x8xf32>
    %c0_14 = arith.constant 0 : index
    %c0_15 = arith.constant 0 : index
    %c0_16 = arith.constant 0 : index
    %32 = vector.load %arg5[%c0_14, %c0_15, %c0_16] : memref<1x8x8xf32, #tpu.memory_space<vmem>>, vector<1x8x8xf32>
    %33 = vector.shape_cast %32 : vector<1x8x8xf32> to vector<8x8xf32>
    %34 = vector.shape_cast %31 : vector<8x8xf32> to vector<1x8x8xf32>
    tpu.vector_store %arg5[%c0_14, %c0_15, %c0_16], %34 {strides = array<i32>} : memref<1x8x8xf32, #tpu.memory_space<vmem>>, vector<1x8x8xf32>,
    return
  }
  func.func @transform_0(%arg0: i32) -> (i32, i32) {
    %c0_i32 = arith.constant 0 : i32
    %c0_i32_0 = arith.constant 0 : i32
    return %arg0, %c0_i32 : i32, i32
  }
  func.func @transform_1(%arg0: i32) -> (i32, i32) {
    %c0_i32 = arith.constant 0 : i32
    %c0_i32_0 = arith.constant 0 : i32
    %c0_i32_1 = arith.constant 0 : i32
    return %c0_i32, %c0_i32_0 : i32, i32
  }
  func.func @transform_2(%arg0: i32) -> (i32, i32) {
    %c0_i32 = arith.constant 0 : i32
    %c0_i32_0 = arith.constant 0 : i32
    return %arg0, %c0_i32 : i32, i32
  }
  func.func @transform_3(%arg0: i32) -> (i32, i32) {
    %c0_i32 = arith.constant 0 : i32
    %c0_i32_0 = arith.constant 0 : i32
    %c0_i32_1 = arith.constant 0 : i32
    return %c0_i32, %c0_i32_0 : i32, i32
  }
  func.func @transform_4(%arg0: i32) -> (i32, i32, i32) {
    %c0_i32 = arith.constant 0 : i32
    %c0_i32_0 = arith.constant 0 : i32
    %c0_i32_1 = arith.constant 0 : i32
    return %arg0, %c0_i32, %c0_i32_0 : i32, i32, i32
  }
}

</mosaic_0001>

<bundles_post_ra>
// kernel: tpu_custom_call.1
= control target key start
LH: loop header
LB: loop body
LE: loop exit
PB: predicated region body
PF: predicated region fallthrough
CT: control target
= control target key end

     0   :  { %9 = vsyncpa [#allocation3], 0  ;;  %s328_s0 = inlined_call_operand.hbm [shape: f32[8,128], index: 0, kind: input, shape index: {}]   ;;  %s329_s1 = inlined_call_operand.hbm [shape: f32[8,128], index: 1, kind: input, shape index: {}]   ;;  %s330_s2 = inlined_call_operand.vmem [shape: bf16[8,8], index: 2, kind: input, shape index: {}]   ;;  %s331_s3 = inlined_call_operand.vmem [shape: f32[1,8], index: 3, kind: input, shape index: {}]   ;;  %s332_s4 = inlined_call_operand.hbm [shape: f32[1,8,8], index: 4, kind: output, shape index: {}]  }
   0x1   :  { %10 = vsyncpa [#allocation6], 0 }
   0x2   :  { %11 = vsyncpa [#allocation4], 0  ;;  %s254_s15 = smov [#allocation2]   ;;  %s255_s17 = smov [#allocation5]  }
   0x3   :  { %s18_s16 = sshll.u32 %s254_s15, 4  ;;  %s28_s18 = sshll.u32 %s255_s17, 4  ;;  %s19_s16 = int_to_ptr.vmem [resolvable:$true] %s18_s16  ;;  %s29_s18 = int_to_ptr.vmem [resolvable:$true] %s28_s18 }
   0x4   :  { %s182_s21 = scalar_lea.hbm %s328_s0, 128 }
   0x5   :  { %p183_p0 = scmp.ne.s32.totalorder %s328_s0, %s182_s21  ;;  %p186_p1 = scmp.lt.u32.totalorder %s182_s21, %s328_s0 }
   0x7   :  { %p188_p2 = pnand %p186_p1, %p183_p0 }
   0x9   :  { %191 = shalt.err (!%p188_p2)
}
   0xa   :  { %s192_s26 = scalar_lea.vmem %s19_s16, 128  ;;  %p197_p4 = scmp.lt.s32.totalorder %s19_s16, %s19_s16 }
   0xb   :  { %p193_p3 = scmp.ne.s32.totalorder %s19_s16, %s192_s26  ;;  %p198_p5 = scmp.lt.s32.totalorder %s192_s26, %s192_s26 }
   0xd   :  { %p199_p6 = por %p198_p5, %p197_p4 }
   0xf   :  { %p200_p7 = pnand %p199_p6, %p193_p3 }
  0x11   :  { %203 = shalt.err (!%p200_p7)
}
  0x12   :  { %21 = dma.hbm_to_vmem [thread:$0]  %s328_s0, 128, %s19_s16, [#allocation3]  }
  0x13   :  { %s204_s5 = scalar_lea.hbm %s329_s1, 128 }
  0x14   :  { %p205_p8 = scmp.ne.s32.totalorder %s329_s1, %s204_s5  ;;  %p208_p9 = scmp.lt.u32.totalorder %s204_s5, %s329_s1 }
  0x16   :  { %p210_p10 = pnand %p208_p9, %p205_p8 }
  0x18   :  { %213 = shalt.err (!%p210_p10)
}
  0x19   :  { %s214_s10 = scalar_lea.vmem %s29_s18, 128  ;;  %p219_p12 = scmp.lt.s32.totalorder %s29_s18, %s29_s18 }
  0x1a   :  { %p215_p11 = scmp.ne.s32.totalorder %s29_s18, %s214_s10  ;;  %p220_p13 = scmp.lt.s32.totalorder %s214_s10, %s214_s10 }
  0x1c   :  { %p221_p0 = por %p220_p13, %p219_p12 }
  0x1e   :  { %p222_p1 = pnand %p221_p0, %p215_p11 }
  0x20   :  { %225 = shalt.err (!%p222_p1)
}
  0x21   :  { %31 = dma.hbm_to_vmem [thread:$0]  %s329_s1, 128, %s29_s18, [#allocation6]  }
  0x22   :  { %248 = dma.done.wait [#allocation3], 128  }
  0x23   :  { %249 = vsyncadd [#allocation3], 4294967168 }
  0x24   :  { %250 = dma.done.wait [#allocation6], 128  }
  0x25   :  { %251 = vsyncadd [#allocation6], 4294967168  ;;  %v42_v0 = vld [vmem:[#allocation2] sm:$0xff]  ;;  %v256_v2 = vmov 0.0   ;;  %v50_v3 = vld [vmem:[#allocation5] sm:$0xff]  ;;  %vm257_vm0 = vmmov 0  }
  0x26   :  { %v43_v1 = vmul.f32 %v42_v0, %v42_v0  ;;  %166 = vmatprep.subr.mxu0 %v256_v2  ;;  %168 = vmatprep.mubr.msk.f32.mxu0 %vm257_vm0, %v256_v2  ;;  %v162_v9 = vld [vmem:[%s331_s3] ss:$0 sm:$0xff]  ;;  %vm134_vm1 = vcmask 64512   ;;  %s258_s3 = smov [#allocation7]  }
  0x27   :  { %167 = vmatpush3.xpose.msra.mxu0 %v50_v3  ;;  %v129_v18 = vld [vmem:[%s330_s2] sm:$0xf]  ;;  %s152_s15 = sshll.u32 %s258_s3, 4  ;;  %s153_s15 = int_to_ptr.vmem [resolvable:$true] %s152_s15 }
  0x28   :  { %44 = vadd.xlane.f32.xlu0 %v43_v1  ;;  %v130_v19 = vunpack.c.l.bf16 %v129_v18  ;;  %s226_s16 = scalar_lea.vmem %s153_s15, 128  ;;  %p231_p3 = scmp.lt.s32.totalorder %s153_s15, %s153_s15 }
  0x29   :  { %p227_p2 = scmp.ne.s32.totalorder %s153_s15, %s226_s16  ;;  %p232_p4 = scmp.lt.s32.totalorder %s226_s16, %s226_s16 }
  0x2b   :  { %p233_p5 = por %p232_p4, %p231_p3 }
  0x2d   :  { %p234_p6 = pnand %p233_p5, %p227_p2 }
  0xb5   :  { %v45_v4 = vpop.xlane.xlu0 %44 }
  0xb6   :  { %v46_v5 = vadd.f32 1e-12, %v45_v4 }
  0xb8   :  { %176 = vrsqrt.f32 %v46_v5 }
  0xc2   :  { %v177_v6 = vpop.eup %176 }
  0xc3   :  { %v48_v7 = vmul.f32 20.0, %v177_v6 }
  0xc5   :  { %v49_v8 = vmul.f32 %v48_v7, %v42_v0 }
  0xc7   :  { %169 = vmatmul.mubr.f32.vlgmr.msra.gmra.mrb[0].mxu0 %v49_v8 }
 0x19a   :  { %v117_v10 = vpop.f32.mrb[0].mxu0 }
 0x19b   :  { %v128_v11 = vmul.f32 %v162_v9, %v117_v10  ;;  %v170_v12 = vpop.f32.mrb[1].mxu0 }
 0x19d   :  { %v163_v13 = vadd.f32 -20.0, %v128_v11  ;;  %v141_v22 = vmul.f32 %v130_v19, %v128_v11 }
 0x19f   :  { %v132_v14 = vmul.f32 1.442695, %v163_v13 }
 0x1a1   :  { %178 = vpow2.f32 %v132_v14 }
 0x1ab   :  { %v179_v15 = vpop.eup %178 }
 0x1ac   :  { %v135_v16 = vsel %vm134_vm1, %v179_v15, 0.0 }
 0x1ad   :  { %136 = vadd.xlane.f32.xlu0 %v135_v16 }
 0x23a   :  { %v137_v17 = vpop.xlane.xlu0 %136 }
 0x23b   :  { %180 = vlog2.f32 %v137_v17 }
 0x245   :  { %v181_v20 = vpop.eup %180 }
 0x246   :  { %v139_v21 = vmul.f32 0.6931472, %v181_v20 }
 0x248   :  { %v140_v23 = vadd.f32 20.0, %v139_v21 }
 0x24a   :  { %v142_v24 = vsub.f32 %v141_v22, %v140_v23 }
 0x24c   :  { %v143_v25 = vmul.f32 %v142_v24, %v130_v19 }
 0x24e   :  { %145 = vst.msk [vmem:[#allocation7] sm:$0xff] %vm134_vm1, %v143_v25 }
 0x24f   :  { %237 = shalt.err (!%p234_p6)
}
 0x250   :  { %s238_s18 = scalar_lea.hbm %s332_s4, 128 }
 0x251   :  { %p239_p7 = scmp.ne.s32.totalorder %s332_s4, %s238_s18  ;;  %p242_p8 = scmp.lt.u32.totalorder %s238_s18, %s332_s4 }
 0x253   :  { %p244_p9 = pnand %p242_p8, %p239_p7 }
 0x255   :  { %247 = shalt.err (!%p244_p9)
}
 0x256   :  { %155 = dma.vmem_to_hbm [thread:$0]  %s153_s15, 128, %s332_s4, [#allocation4]  }
 0x257   :  { %252 = dma.done.wait [#allocation4], 128  }
 0x258   :  { %253 = vsyncadd [#allocation4], 4294967168 }
 0x259   :  { %159 = vsyncpa [#allocation3], 1 }
 0x25a   :  { %160 = vsyncpa [#allocation6], 1 }
 0x25b   :  { %161 = vsyncpa [#allocation4], 1 }

</bundles_post_ra>
